<compile_context>
chip_gen: v7x
topology: tpu7x:2x2x1
jax: 0.10.0
libtpu: 0.0.40
codegen_flags: <defaults>
</compile_context>

<pallas_src>
import functools

import jax
import jax.numpy as jnp
from jax.experimental import pallas as pl
from jax.experimental.pallas import tpu as pltpu

_NORM_EPS = 1e-12   # F.normalize default eps
_PD_EPS = 1e-6      # F.pairwise_distance default eps

_LANE_CHUNK = 128                      # samples processed per inner chunk
_MAX_TILE = 1024                       # max samples per outer DMA tile
_TILE_BYTES_BUDGET = 8 * 1024 * 1024   # double-buffered input tile budget
_VMEM_LIMIT_BYTES = 32 * 1024 * 1024   # safe on v7x (64 MiB physical)


def _multi_distance_loss_kernel(x_ref, o_ref, xt_ref, *, relation, margin,
                                batch_total):
    # x_ref : [tb, D*R] (input dtype) -- one contiguous HBM tile, samples on rows.
    # o_ref : [1, 1] f32              -- per-tile partial sum.
    # xt_ref: [D*R, CH] f32 scratch   -- transposed chunk (samples on lanes).
    tb, DR = x_ref.shape
    D = DR // relation
    CH = xt_ref.shape[1]
    tile_base = pl.program_id(0) * tb

    acc = jnp.zeros((1, 1), jnp.float32)
    col = 0
    while col < tb:                      # static Python loop over lane chunks
        size = min(CH, tb - col)

        # Cast + transpose this chunk so samples land on lanes and D*R on
        # sublanes (XLU is idle here; per-sample scalars become lane-dense).
        xt_ref[:, pl.ds(0, size)] = jnp.transpose(
            x_ref[pl.ds(col, size), :].astype(jnp.float32), (1, 0))

        # De-interleave relations with sublane-strided reads and normalize.
        xs = []
        for r in range(relation):
            v = xt_ref[pl.ds(r, D, stride=relation), pl.ds(0, size)]  # [D, size]
            ssq = jnp.sum(v * v, axis=0, keepdims=True)               # [1, size]
            # x / max(||x||, eps)  ==  x * rsqrt(max(||x||^2, eps^2))
            inv = jax.lax.rsqrt(jnp.maximum(ssq, _NORM_EPS * _NORM_EPS))
            xs.append(v * inv)

        def pdist(a, b):
            d = a - b + _PD_EPS
            return jnp.sqrt(jnp.sum(d * d, axis=0, keepdims=True))    # [1, size]

        total = jnp.zeros((1, size), jnp.float32)
        if relation >= 3:
            for r in range(relation):
                i = (r + 1) % relation
                dp_m = pdist(xs[r], xs[i]) + margin   # hoisted out of the j loop
                for j in range(relation):
                    if j != i and j != r:
                        dn = pdist(xs[r], xs[j])
                        total = total + jnp.maximum(dp_m - dn, 0.0)
        else:  # relation == 2
            dn = pdist(xs[0], xs[1])
            total = total + jnp.maximum(dn + margin, 0.0)

        # Mask padded batch lanes (keep as a select: padded columns may hold
        # garbage that turned into NaN/Inf through the normalize/sqrt chain).
        lane = jax.lax.broadcasted_iota(jnp.int32, (1, size), 1)
        valid = (tile_base + col + lane) < batch_total
        total = jnp.where(valid, total, 0.0)

        acc = acc + jnp.sum(total, axis=1, keepdims=True)
        col += size

    o_ref[...] = acc


def _pick_block_b(B, DR, itemsize):
    """Pick the per-grid-step batch tile (multiple of 128 or the full batch)."""
    if B <= _LANE_CHUNK:
        return B                                    # single full-dim tile
    # Prefer >= 2 tiles so both v7x TensorCores get work under "parallel".
    half = ((pl.cdiv(B, 2) + 127) // 128) * 128
    tb = min(_MAX_TILE, half)
    # Keep the double-buffered input tile inside the VMEM budget (the f32
    # scratch is only D*R x 128 and is accounted for by the budget headroom).
    per_row = 2 * DR * itemsize
    cap = (_TILE_BYTES_BUDGET // per_row) // 128 * 128
    if cap >= 128:
        tb = min(tb, cap)
    return max(128, tb)


def multi_distance_loss(x, *, margin, relation, block_b=None):
    """x: [B, D, R]. Returns scalar float32 loss matching MultiDistanceLoss."""
    if relation < 2:
        return jnp.float32(0.0)

    B, D, R = x.shape
    assert R == relation
    DR = D * R
    itemsize = jnp.dtype(x.dtype).itemsize

    # Row-major reshape is free: relations stay interleaved in the minor dim
    # and are de-interleaved on-chip, so x crosses HBM exactly once at its
    # native dtype (bf16/f16 callers pay half the HBM bytes automatically).
    x2 = x.reshape(B, DR)

    if block_b is None:
        tb = _pick_block_b(B, DR, itemsize)
    else:
        tb = B if B <= block_b else max(128, (block_b // 128) * 128)
    num_tiles = pl.cdiv(B, tb)
    chunk = min(_LANE_CHUNK, tb)

    if relation >= 3:
        n_dists = relation * (relation - 1)
        n_hinges = relation * (relation - 2)
    else:
        n_dists, n_hinges = 1, 1
    cost = pl.CostEstimate(
        flops=B * D * (3 * relation + 3 * n_dists) + 4 * B * n_hinges,
        transcendentals=B * (relation + n_dists),
        bytes_accessed=x.size * itemsize + num_tiles * 4,
    )

    partials = pl.pallas_call(
        functools.partial(_multi_distance_loss_kernel, relation=relation,
                          margin=float(margin), batch_total=B),
        out_shape=jax.ShapeDtypeStruct((num_tiles, 1), jnp.float32),
        grid=(num_tiles,),
        in_specs=[pl.BlockSpec((tb, DR), lambda i: (i, 0))],
        out_specs=pl.BlockSpec((1, 1), lambda i: (i, 0)),
        scratch_shapes=[pltpu.VMEM((DR, chunk), jnp.float32)],
        compiler_params=pltpu.CompilerParams(
            dimension_semantics=("parallel",),
            vmem_limit_bytes=_VMEM_LIMIT_BYTES),
        cost_estimate=cost,
    )(x2)

    return jnp.sum(partials) / jnp.float32(B)


def _reference(x, *, margin, relation):
    """Pure-JAX reference mirroring the PyTorch forward."""
    xs = []
    for r in range(relation):
        v = x[..., r].astype(jnp.float32)
        nrm = jnp.sqrt(jnp.sum(v * v, axis=-1, keepdims=True))
        xs.append(v / jnp.maximum(nrm, _NORM_EPS))

    def pdist(a, b):
        d = a - b + _PD_EPS
        return jnp.sqrt(jnp.sum(d * d, axis=-1))

    if relation >= 3:
        total = 0.0
        for r in range(relation):
            i = (r + 1) % relation
            for j in range(relation):
                if j != i and j != r:
                    dp = pdist(xs[r], xs[i])
                    dn = pdist(xs[r], xs[j])
                    total = total + jnp.maximum(dp - dn + margin, 0.0)
        return jnp.mean(total)
    elif relation == 2:
        dn = pdist(xs[0], xs[1])
        return jnp.mean(jnp.maximum(dn + margin, 0.0))
    return jnp.float32(0.0)
    # TODO(synk): relation==2 branch mirrors the module code literally; confirm
    # intended semantics with the PyTorch owners before relying on it.


if __name__ == "__main__":
    margin = 0.5
    D, R = 32, 4

    # Case 1: tiny batch, single tile, single chunk.
    B = 8
    x = jax.random.normal(jax.random.PRNGKey(0), (B, D, R), dtype=jnp.float32)
    loss = jax.block_until_ready(multi_distance_loss(x, margin=margin, relation=R))
    ref = jax.block_until_ready(_reference(x, margin=margin, relation=R))
    assert jnp.allclose(loss, ref, rtol=1e-5, atol=1e-5), (loss, ref)

    # Case 2: multi-tile grid (>=2 tiles -> both v7x cores) with a padded
    # last tile exercising the batch mask.
    B2 = 200
    x2 = jax.random.normal(jax.random.PRNGKey(1), (B2, D, R), dtype=jnp.float32)
    loss2 = jax.block_until_ready(multi_distance_loss(x2, margin=margin, relation=R))
    ref2 = jax.block_until_ready(_reference(x2, margin=margin, relation=R))
    assert jnp.allclose(loss2, ref2, rtol=1e-5, atol=1e-5), (loss2, ref2)

    # Case 3: bf16 input crosses HBM at native width; math stays f32 in-kernel.
    B3 = 300
    x3 = jax.random.normal(jax.random.PRNGKey(2), (B3, D, R)).astype(jnp.bfloat16)
    loss3 = jax.block_until_ready(multi_distance_loss(x3, margin=margin, relation=R))
    ref3 = jax.block_until_ready(_reference(x3, margin=margin, relation=R))
    assert jnp.allclose(loss3, ref3, rtol=1e-5, atol=1e-5), (loss3, ref3)

    print("KERNEL_OK")
</pallas_src>

<mosaic_0001>
module attributes {stable_mosaic.version = 11 : i64} {
  func.func @_multi_distance_loss_kernel(%arg0: i32, %arg1: memref<8x128xf32, #tpu.memory_space<vmem>>, %arg2: memref<1x1xf32, #tpu.memory_space<vmem>>, %arg3: memref<128x8xf32, #tpu.memory_space<vmem>>) attributes {dimension_semantics = [#tpu.dimension_semantics<parallel>], iteration_bounds = array<i64: 1>, scalar_prefetch = 0 : i64, scratch_operands = 1 : i64, tpu.core_type = #tpu.core_type<tc>, window_params = [{transform_indices = @transform_0, window_bounds = array<i64: 8, 128>}, {transform_indices = @transform_1, window_bounds = array<i64: 1, 1>}]} {
    %c8_i32 = arith.constant 8 : i32
    %0 = arith.muli %arg0, %c8_i32 : i32
    %cst = arith.constant 0.000000e+00 : f32
    %1 = vector.broadcast %cst : f32 to vector<1x1xf32>
    %c0 = arith.constant 0 : index
    %c0_0 = arith.constant 0 : index
    %2 = vector.load %arg1[%c0, %c0_0] : memref<8x128xf32, #tpu.memory_space<vmem>>, vector<8x128xf32>
    %3 = tpu.transpose %2, [1, 0] : vector<8x128xf32> -> vector<128x8xf32>
    %c0_1 = arith.constant 0 : index
    %c0_2 = arith.constant 0 : index
    %4 = vector.load %arg3[%c0_1, %c0_2] : memref<128x8xf32, #tpu.memory_space<vmem>>, vector<128x8xf32>
    tpu.vector_store %arg3[%c0_1, %c0_2], %3 {strides = array<i32>} : memref<128x8xf32, #tpu.memory_space<vmem>>, vector<128x8xf32>,
    %c0_3 = arith.constant 0 : index
    %c0_4 = arith.constant 0 : index
    %5 = tpu.strided_load %arg3[%c0_3, %c0_4] {strides = array<i32: 4, 1>} : memref<128x8xf32, #tpu.memory_space<vmem>>, vector<32x8xf32>
    %6 = arith.mulf %5, %5 : vector<32x8xf32>
    %cst_5 = arith.constant dense<0.000000e+00> : vector<8xf32>
    %7 = vector.multi_reduction <add>, %6, %cst_5 [0] : vector<32x8xf32> to vector<8xf32>
    %8 = vector.shape_cast %7 : vector<8xf32> to vector<1x8xf32>
    %cst_6 = arith.constant 1.000000e-24 : f32
    %9 = vector.broadcast %cst_6 : f32 to vector<1x8xf32>
    %10 = arith.maximumf %8, %9 : vector<1x8xf32>
    %11 = math.rsqrt %10 : vector<1x8xf32>
    %12 = vector.broadcast %11 : vector<1x8xf32> to vector<32x8xf32>
    %13 = arith.mulf %5, %12 : vector<32x8xf32>
    %c1 = arith.constant 1 : index
    %c0_7 = arith.constant 0 : index
    %14 = tpu.strided_load %arg3[%c1, %c0_7] {strides = array<i32: 4, 1>} : memref<128x8xf32, #tpu.memory_space<vmem>>, vector<32x8xf32>
    %15 = arith.mulf %14, %14 : vector<32x8xf32>
    %cst_8 = arith.constant dense<0.000000e+00> : vector<8xf32>
    %16 = vector.multi_reduction <add>, %15, %cst_8 [0] : vector<32x8xf32> to vector<8xf32>
    %17 = vector.shape_cast %16 : vector<8xf32> to vector<1x8xf32>
    %cst_9 = arith.constant 1.000000e-24 : f32
    %18 = vector.broadcast %cst_9 : f32 to vector<1x8xf32>
    %19 = arith.maximumf %17, %18 : vector<1x8xf32>
    %20 = math.rsqrt %19 : vector<1x8xf32>
    %21 = vector.broadcast %20 : vector<1x8xf32> to vector<32x8xf32>
    %22 = arith.mulf %14, %21 : vector<32x8xf32>
    %c2 = arith.constant 2 : index
    %c0_10 = arith.constant 0 : index
    %23 = tpu.strided_load %arg3[%c2, %c0_10] {strides = array<i32: 4, 1>} : memref<128x8xf32, #tpu.memory_space<vmem>>, vector<32x8xf32>
    %24 = arith.mulf %23, %23 : vector<32x8xf32>
    %cst_11 = arith.constant dense<0.000000e+00> : vector<8xf32>
    %25 = vector.multi_reduction <add>, %24, %cst_11 [0] : vector<32x8xf32> to vector<8xf32>
    %26 = vector.shape_cast %25 : vector<8xf32> to vector<1x8xf32>
    %cst_12 = arith.constant 1.000000e-24 : f32
    %27 = vector.broadcast %cst_12 : f32 to vector<1x8xf32>
    %28 = arith.maximumf %26, %27 : vector<1x8xf32>
    %29 = math.rsqrt %28 : vector<1x8xf32>
    %30 = vector.broadcast %29 : vector<1x8xf32> to vector<32x8xf32>
    %31 = arith.mulf %23, %30 : vector<32x8xf32>
    %c3 = arith.constant 3 : index
    %c0_13 = arith.constant 0 : index
    %32 = tpu.strided_load %arg3[%c3, %c0_13] {strides = array<i32: 4, 1>} : memref<128x8xf32, #tpu.memory_space<vmem>>, vector<32x8xf32>
    %33 = arith.mulf %32, %32 : vector<32x8xf32>
    %cst_14 = arith.constant dense<0.000000e+00> : vector<8xf32>
    %34 = vector.multi_reduction <add>, %33, %cst_14 [0] : vector<32x8xf32> to vector<8xf32>
    %35 = vector.shape_cast %34 : vector<8xf32> to vector<1x8xf32>
    %cst_15 = arith.constant 1.000000e-24 : f32
    %36 = vector.broadcast %cst_15 : f32 to vector<1x8xf32>
    %37 = arith.maximumf %35, %36 : vector<1x8xf32>
    %38 = math.rsqrt %37 : vector<1x8xf32>
    %39 = vector.broadcast %38 : vector<1x8xf32> to vector<32x8xf32>
    %40 = arith.mulf %32, %39 : vector<32x8xf32>
    %cst_16 = arith.constant 0.000000e+00 : f32
    %41 = vector.broadcast %cst_16 : f32 to vector<1x8xf32>
    %42 = arith.subf %13, %22 : vector<32x8xf32>
    %cst_17 = arith.constant 9.99999997E-7 : f32
    %43 = vector.broadcast %cst_17 : f32 to vector<32x8xf32>
    %44 = arith.addf %42, %43 : vector<32x8xf32>
    %45 = arith.mulf %44, %44 : vector<32x8xf32>
    %cst_18 = arith.constant dense<0.000000e+00> : vector<8xf32>
    %46 = vector.multi_reduction <add>, %45, %cst_18 [0] : vector<32x8xf32> to vector<8xf32>
    %47 = vector.shape_cast %46 : vector<8xf32> to vector<1x8xf32>
    %48 = math.sqrt %47 : vector<1x8xf32>
    %cst_19 = arith.constant 5.000000e-01 : f32
    %49 = vector.broadcast %cst_19 : f32 to vector<1x8xf32>
    %50 = arith.addf %48, %49 : vector<1x8xf32>
    %51 = arith.subf %13, %31 : vector<32x8xf32>
    %cst_20 = arith.constant 9.99999997E-7 : f32
    %52 = vector.broadcast %cst_20 : f32 to vector<32x8xf32>
    %53 = arith.addf %51, %52 : vector<32x8xf32>
    %54 = arith.mulf %53, %53 : vector<32x8xf32>
    %cst_21 = arith.constant dense<0.000000e+00> : vector<8xf32>
    %55 = vector.multi_reduction <add>, %54, %cst_21 [0] : vector<32x8xf32> to vector<8xf32>
    %56 = vector.shape_cast %55 : vector<8xf32> to vector<1x8xf32>
    %57 = math.sqrt %56 : vector<1x8xf32>
    %58 = arith.subf %50, %57 : vector<1x8xf32>
    %cst_22 = arith.constant 0.000000e+00 : f32
    %59 = vector.broadcast %cst_22 : f32 to vector<1x8xf32>
    %60 = arith.maximumf %58, %59 : vector<1x8xf32>
    %61 = arith.addf %41, %60 : vector<1x8xf32>
    %62 = arith.subf %13, %40 : vector<32x8xf32>
    %cst_23 = arith.constant 9.99999997E-7 : f32
    %63 = vector.broadcast %cst_23 : f32 to vector<32x8xf32>
    %64 = arith.addf %62, %63 : vector<32x8xf32>
    %65 = arith.mulf %64, %64 : vector<32x8xf32>
    %cst_24 = arith.constant dense<0.000000e+00> : vector<8xf32>
    %66 = vector.multi_reduction <add>, %65, %cst_24 [0] : vector<32x8xf32> to vector<8xf32>
    %67 = vector.shape_cast %66 : vector<8xf32> to vector<1x8xf32>
    %68 = math.sqrt %67 : vector<1x8xf32>
    %69 = arith.subf %50, %68 : vector<1x8xf32>
    %cst_25 = arith.constant 0.000000e+00 : f32
    %70 = vector.broadcast %cst_25 : f32 to vector<1x8xf32>
    %71 = arith.maximumf %69, %70 : vector<1x8xf32>
    %72 = arith.addf %61, %71 : vector<1x8xf32>
    %73 = arith.subf %22, %31 : vector<32x8xf32>
    %cst_26 = arith.constant 9.99999997E-7 : f32
    %74 = vector.broadcast %cst_26 : f32 to vector<32x8xf32>
    %75 = arith.addf %73, %74 : vector<32x8xf32>
    %76 = arith.mulf %75, %75 : vector<32x8xf32>
    %cst_27 = arith.constant dense<0.000000e+00> : vector<8xf32>
    %77 = vector.multi_reduction <add>, %76, %cst_27 [0] : vector<32x8xf32> to vector<8xf32>
    %78 = vector.shape_cast %77 : vector<8xf32> to vector<1x8xf32>
    %79 = math.sqrt %78 : vector<1x8xf32>
    %cst_28 = arith.constant 5.000000e-01 : f32
    %80 = vector.broadcast %cst_28 : f32 to vector<1x8xf32>
    %81 = arith.addf %79, %80 : vector<1x8xf32>
    %82 = arith.subf %22, %13 : vector<32x8xf32>
    %cst_29 = arith.constant 9.99999997E-7 : f32
    %83 = vector.broadcast %cst_29 : f32 to vector<32x8xf32>
    %84 = arith.addf %82, %83 : vector<32x8xf32>
    %85 = arith.mulf %84, %84 : vector<32x8xf32>
    %cst_30 = arith.constant dense<0.000000e+00> : vector<8xf32>
    %86 = vector.multi_reduction <add>, %85, %cst_30 [0] : vector<32x8xf32> to vector<8xf32>
    %87 = vector.shape_cast %86 : vector<8xf32> to vector<1x8xf32>
    %88 = math.sqrt %87 : vector<1x8xf32>
    %89 = arith.subf %81, %88 : vector<1x8xf32>
    %cst_31 = arith.constant 0.000000e+00 : f32
    %90 = vector.broadcast %cst_31 : f32 to vector<1x8xf32>
    %91 = arith.maximumf %89, %90 : vector<1x8xf32>
    %92 = arith.addf %72, %91 : vector<1x8xf32>
    %93 = arith.subf %22, %40 : vector<32x8xf32>
    %cst_32 = arith.constant 9.99999997E-7 : f32
    %94 = vector.broadcast %cst_32 : f32 to vector<32x8xf32>
    %95 = arith.addf %93, %94 : vector<32x8xf32>
    %96 = arith.mulf %95, %95 : vector<32x8xf32>
    %cst_33 = arith.constant dense<0.000000e+00> : vector<8xf32>
    %97 = vector.multi_reduction <add>, %96, %cst_33 [0] : vector<32x8xf32> to vector<8xf32>
    %98 = vector.shape_cast %97 : vector<8xf32> to vector<1x8xf32>
    %99 = math.sqrt %98 : vector<1x8xf32>
    %100 = arith.subf %81, %99 : vector<1x8xf32>
    %cst_34 = arith.constant 0.000000e+00 : f32
    %101 = vector.broadcast %cst_34 : f32 to vector<1x8xf32>
    %102 = arith.maximumf %100, %101 : vector<1x8xf32>
    %103 = arith.addf %92, %102 : vector<1x8xf32>
    %104 = arith.subf %31, %40 : vector<32x8xf32>
    %cst_35 = arith.constant 9.99999997E-7 : f32
    %105 = vector.broadcast %cst_35 : f32 to vector<32x8xf32>
    %106 = arith.addf %104, %105 : vector<32x8xf32>
    %107 = arith.mulf %106, %106 : vector<32x8xf32>
    %cst_36 = arith.constant dense<0.000000e+00> : vector<8xf32>
    %108 = vector.multi_reduction <add>, %107, %cst_36 [0] : vector<32x8xf32> to vector<8xf32>
    %109 = vector.shape_cast %108 : vector<8xf32> to vector<1x8xf32>
    %110 = math.sqrt %109 : vector<1x8xf32>
    %cst_37 = arith.constant 5.000000e-01 : f32
    %111 = vector.broadcast %cst_37 : f32 to vector<1x8xf32>
    %112 = arith.addf %110, %111 : vector<1x8xf32>
    %113 = arith.subf %31, %13 : vector<32x8xf32>
    %cst_38 = arith.constant 9.99999997E-7 : f32
    %114 = vector.broadcast %cst_38 : f32 to vector<32x8xf32>
    %115 = arith.addf %113, %114 : vector<32x8xf32>
    %116 = arith.mulf %115, %115 : vector<32x8xf32>
    %cst_39 = arith.constant dense<0.000000e+00> : vector<8xf32>
    %117 = vector.multi_reduction <add>, %116, %cst_39 [0] : vector<32x8xf32> to vector<8xf32>
    %118 = vector.shape_cast %117 : vector<8xf32> to vector<1x8xf32>
    %119 = math.sqrt %118 : vector<1x8xf32>
    %120 = arith.subf %112, %119 : vector<1x8xf32>
    %cst_40 = arith.constant 0.000000e+00 : f32
    %121 = vector.broadcast %cst_40 : f32 to vector<1x8xf32>
    %122 = arith.maximumf %120, %121 : vector<1x8xf32>
    %123 = arith.addf %103, %122 : vector<1x8xf32>
    %124 = arith.subf %31, %22 : vector<32x8xf32>
    %cst_41 = arith.constant 9.99999997E-7 : f32
    %125 = vector.broadcast %cst_41 : f32 to vector<32x8xf32>
    %126 = arith.addf %124, %125 : vector<32x8xf32>
    %127 = arith.mulf %126, %126 : vector<32x8xf32>
    %cst_42 = arith.constant dense<0.000000e+00> : vector<8xf32>
    %128 = vector.multi_reduction <add>, %127, %cst_42 [0] : vector<32x8xf32> to vector<8xf32>
    %129 = vector.shape_cast %128 : vector<8xf32> to vector<1x8xf32>
    %130 = math.sqrt %129 : vector<1x8xf32>
    %131 = arith.subf %112, %130 : vector<1x8xf32>
    %cst_43 = arith.constant 0.000000e+00 : f32
    %132 = vector.broadcast %cst_43 : f32 to vector<1x8xf32>
    %133 = arith.maximumf %131, %132 : vector<1x8xf32>
    %134 = arith.addf %123, %133 : vector<1x8xf32>
    %135 = arith.subf %40, %13 : vector<32x8xf32>
    %cst_44 = arith.constant 9.99999997E-7 : f32
    %136 = vector.broadcast %cst_44 : f32 to vector<32x8xf32>
    %137 = arith.addf %135, %136 : vector<32x8xf32>
    %138 = arith.mulf %137, %137 : vector<32x8xf32>
    %cst_45 = arith.constant dense<0.000000e+00> : vector<8xf32>
    %139 = vector.multi_reduction <add>, %138, %cst_45 [0] : vector<32x8xf32> to vector<8xf32>
    %140 = vector.shape_cast %139 : vector<8xf32> to vector<1x8xf32>
    %141 = math.sqrt %140 : vector<1x8xf32>
    %cst_46 = arith.constant 5.000000e-01 : f32
    %142 = vector.broadcast %cst_46 : f32 to vector<1x8xf32>
    %143 = arith.addf %141, %142 : vector<1x8xf32>
    %144 = arith.subf %40, %22 : vector<32x8xf32>
    %cst_47 = arith.constant 9.99999997E-7 : f32
    %145 = vector.broadcast %cst_47 : f32 to vector<32x8xf32>
    %146 = arith.addf %144, %145 : vector<32x8xf32>
    %147 = arith.mulf %146, %146 : vector<32x8xf32>
    %cst_48 = arith.constant dense<0.000000e+00> : vector<8xf32>
    %148 = vector.multi_reduction <add>, %147, %cst_48 [0] : vector<32x8xf32> to vector<8xf32>
    %149 = vector.shape_cast %148 : vector<8xf32> to vector<1x8xf32>
    %150 = math.sqrt %149 : vector<1x8xf32>
    %151 = arith.subf %143, %150 : vector<1x8xf32>
    %cst_49 = arith.constant 0.000000e+00 : f32
    %152 = vector.broadcast %cst_49 : f32 to vector<1x8xf32>
    %153 = arith.maximumf %151, %152 : vector<1x8xf32>
    %154 = arith.addf %134, %153 : vector<1x8xf32>
    %155 = arith.subf %40, %31 : vector<32x8xf32>
    %cst_50 = arith.constant 9.99999997E-7 : f32
    %156 = vector.broadcast %cst_50 : f32 to vector<32x8xf32>
    %157 = arith.addf %155, %156 : vector<32x8xf32>
    %158 = arith.mulf %157, %157 : vector<32x8xf32>
    %cst_51 = arith.constant dense<0.000000e+00> : vector<8xf32>
    %159 = vector.multi_reduction <add>, %158, %cst_51 [0] : vector<32x8xf32> to vector<8xf32>
    %160 = vector.shape_cast %159 : vector<8xf32> to vector<1x8xf32>
    %161 = math.sqrt %160 : vector<1x8xf32>
    %162 = arith.subf %143, %161 : vector<1x8xf32>
    %cst_52 = arith.constant 0.000000e+00 : f32
    %163 = vector.broadcast %cst_52 : f32 to vector<1x8xf32>
    %164 = arith.maximumf %162, %163 : vector<1x8xf32>
    %165 = arith.addf %154, %164 : vector<1x8xf32>
    %166 = tpu.iota {dimensions = array<i32: 1>} : vector<1x8xi32>
    %c0_i32 = arith.constant 0 : i32
    %167 = arith.addi %0, %c0_i32 : i32
    %168 = vector.broadcast %167 : i32 to vector<1x8xi32>
    %169 = arith.addi %168, %166 : vector<1x8xi32>
    %c8_i32_53 = arith.constant 8 : i32
    %170 = vector.broadcast %c8_i32_53 : i32 to vector<1x8xi32>
    %171 = arith.cmpi slt, %169, %170 : vector<1x8xi32>
    %cst_54 = arith.constant 0.000000e+00 : f32
    %172 = vector.broadcast %cst_54 : f32 to vector<1x8xf32>
    %173 = arith.select %171, %165, %172 : vector<1x8xi1>, vector<1x8xf32>
    %cst_55 = arith.constant dense<0.000000e+00> : vector<1xf32>
    %174 = vector.multi_reduction <add>, %173, %cst_55 [1] : vector<1x8xf32> to vector<1xf32>
    %175 = vector.shape_cast %174 : vector<1xf32> to vector<1x1xf32>
    %176 = arith.addf %1, %175 : vector<1x1xf32>
    %c0_56 = arith.constant 0 : index
    %c0_57 = arith.constant 0 : index
    %177 = vector.load %arg2[%c0_56, %c0_57] : memref<1x1xf32, #tpu.memory_space<vmem>>, vector<1x1xf32>
    tpu.vector_store %arg2[%c0_56, %c0_57], %176 {strides = array<i32>} : memref<1x1xf32, #tpu.memory_space<vmem>>, vector<1x1xf32>,
    return
  }
  func.func @transform_0(%arg0: i32) -> (i32, i32) {
    %c0_i32 = arith.constant 0 : i32
    %c0_i32_0 = arith.constant 0 : i32
    return %arg0, %c0_i32 : i32, i32
  }
  func.func @transform_1(%arg0: i32) -> (i32, i32) {
    %c0_i32 = arith.constant 0 : i32
    %c0_i32_0 = arith.constant 0 : i32
    return %arg0, %c0_i32 : i32, i32
  }
}

</mosaic_0001>

<bundles_post_ra>
// kernel: tpu_custom_call.1
= control target key start
LH: loop header
LB: loop body
LE: loop exit
PB: predicated region body
PF: predicated region fallthrough
CT: control target
= control target key end

     0   :  { %6 = vsyncpa [#allocation4], 0  ;;  %s1142_s0 = inlined_call_operand.hbm [shape: f32[8,128], index: 0, kind: input, shape index: {}]   ;;  %s1143_s1 = inlined_call_operand.hbm [shape: f32[1,1], index: 1, kind: output, shape index: {}]  }
   0x1   :  { %7 = vsyncpa [#allocation5], 0  ;;  %s717_s6 = smov [#allocation3]   ;;  %s669_s10 = scalar_lea.hbm %s1142_s0, 128 }
   0x2   :  { %s14_s7 = sshll.u32 %s717_s6, 4  ;;  %p670_p0 = scmp.ne.s32.totalorder %s1142_s0, %s669_s10  ;;  %s15_s7 = int_to_ptr.vmem [resolvable:$true] %s14_s7 }
   0x3   :  { %p673_p1 = scmp.lt.u32.totalorder %s669_s10, %s1142_s0 }
   0x5   :  { %p675_p2 = pnand %p673_p1, %p670_p0 }
   0x7   :  { %678 = shalt.err (!%p675_p2)
}
   0x8   :  { %s679_s15 = scalar_lea.vmem %s15_s7, 128  ;;  %p684_p4 = scmp.lt.s32.totalorder %s15_s7, %s15_s7 }
   0x9   :  { %p680_p3 = scmp.ne.s32.totalorder %s15_s7, %s679_s15  ;;  %p685_p5 = scmp.lt.s32.totalorder %s679_s15, %s679_s15 }
   0xb   :  { %p686_p6 = por %p685_p5, %p684_p4 }
   0xd   :  { %p687_p7 = pnand %p686_p6, %p680_p3 }
   0xf   :  { %690 = shalt.err (!%p687_p7)
}
  0x10   :  { %17 = dma.hbm_to_vmem [thread:$0]  %s1142_s0, 128, %s15_s7, [#allocation4]  }
  0x11   :  { %713 = dma.done.wait [#allocation4], 128  }
  0x12   :  { %714 = vsyncadd [#allocation4], 4294967168  ;;  %v22_v0 = vld [vmem:[#allocation3] sm:$0xff]  ;;  %vm55_vm0 = vcmask 64512   ;;  %s718_s0 = smov [#allocation6]  }
  0x13   :  { %23 = vxpose.xlu0.b32.start.end [1/1] (short) %v22_v0, 128  ;;  %s625_s18 = sshll.u32 %s718_s0, 4  ;;  %s626_s18 = int_to_ptr.vmem [resolvable:$true] %s625_s18 }
  0x14   :  { %s691_s19 = scalar_lea.vmem %s626_s18, 16  ;;  %s695_s20 = scalar_lea.vmem %s626_s18, 32 }
  0x15   :  { %p692_p8 = scmp.ne.s32.totalorder %s626_s18, %s691_s19  ;;  %p696_p9 = scmp.lt.s32.totalorder %s626_s18, %s626_s18 }
  0x16   :  { %p697_p10 = scmp.lt.s32.totalorder %s695_s20, %s691_s19 }
  0x18   :  { %p698_p11 = por %p697_p10, %p696_p9 }
  0x1a   :  { %p699_p12 = pnand %p698_p11, %p692_p8 }
  0x93   :  { %v39_v1 = vpop.trf.xlu0 }
  0x94   :  { %56 = vst.msk [vmem:[#allocation2] sm:$0xff] %vm55_vm0, %v39_v1 }
  0x97   :  { %v40_v2 = vpop.trf.xlu0 }
  0x98   :  { %57 = vst.msk [vmem:[#allocation2 + $0x8] sm:$0xff] %vm55_vm0, %v40_v2 }
  0x9b   :  { %v41_v3 = vpop.trf.xlu0 }
  0x9c   :  { %58 = vst.msk [vmem:[#allocation2 + $0x10] sm:$0xff] %vm55_vm0, %v41_v3 }
  0x9f   :  { %v42_v4 = vpop.trf.xlu0 }
  0xa0   :  { %59 = vst.msk [vmem:[#allocation2 + $0x18] sm:$0xff] %vm55_vm0, %v42_v4 }
  0xa3   :  { %v43_v5 = vpop.trf.xlu0 }
  0xa4   :  { %60 = vst.msk [vmem:[#allocation2 + $0x20] sm:$0xff] %vm55_vm0, %v43_v5 }
  0xa7   :  { %v44_v6 = vpop.trf.xlu0  ;;  %v755_v16 = vld [vmem:[#allocation2] ss:$4 sm:$0xff]  ;;  %v757_v17 = vld [vmem:[#allocation2 + $0x1] ss:$4 sm:$0xff]  ;;  %v759_v18 = vld [vmem:[#allocation2 + $0x2] ss:$4 sm:$0xff] }
  0xa8   :  { %61 = vst.msk [vmem:[#allocation2 + $0x28] sm:$0xff] %vm55_vm0, %v44_v6  ;;  %v768_v22 = vld [vmem:[#allocation2 + $0x3] ss:$4 sm:$0xff]  ;;  %v79_v29 = vmul.f32 %v755_v16, %v755_v16  ;;  %v110_v33 = vmul.f32 %v757_v17, %v757_v17  ;;  %v141_v34 = vmul.f32 %v759_v18, %v759_v18 }
  0xa9   :  { %v172_v35 = vmul.f32 %v768_v22, %v768_v22 }
  0xaa   :  { %v83_v41 = vsel %vm55_vm0, %v79_v29, 0.0  ;;  %v114_v45 = vsel %vm55_vm0, %v110_v33, 0.0  ;;  %v145_v46 = vsel %vm55_vm0, %v141_v34, 0.0 }
  0xab   :  { %v45_v7 = vpop.trf.xlu0  ;;  %v176_v47 = vsel %vm55_vm0, %v172_v35, 0.0 }
  0xac   :  { %62 = vst.msk [vmem:[#allocation2 + $0x30] sm:$0xff] %vm55_vm0, %v45_v7 }
  0xaf   :  { %v46_v8 = vpop.trf.xlu0 }
  0xb0   :  { %63 = vst.msk [vmem:[#allocation2 + $0x38] sm:$0xff] %vm55_vm0, %v46_v8 }
  0xb3   :  { %v47_v9 = vpop.trf.xlu0 }
  0xb4   :  { %64 = vst.msk [vmem:[#allocation2 + $0x40] sm:$0xff] %vm55_vm0, %v47_v9 }
  0xb7   :  { %v48_v10 = vpop.trf.xlu0  ;;  %v762_v19 = vld [vmem:[#allocation2 + $0x20] ss:$4 sm:$0xff]  ;;  %v764_v20 = vld [vmem:[#allocation2 + $0x21] ss:$4 sm:$0xff]  ;;  %v766_v21 = vld [vmem:[#allocation2 + $0x22] ss:$4 sm:$0xff] }
  0xb8   :  { %65 = vst.msk [vmem:[#allocation2 + $0x48] sm:$0xff] %vm55_vm0, %v48_v10  ;;  %v770_v23 = vld [vmem:[#allocation2 + $0x23] ss:$4 sm:$0xff]  ;;  %v80_v30 = vmul.f32 %v762_v19, %v762_v19  ;;  %v111_v31 = vmul.f32 %v764_v20, %v764_v20  ;;  %v142_v32 = vmul.f32 %v766_v21, %v766_v21 }
  0xb9   :  { %v173_v36 = vmul.f32 %v770_v23, %v770_v23 }
  0xba   :  { %v84_v42 = vsel %vm55_vm0, %v80_v30, 0.0  ;;  %v115_v43 = vsel %vm55_vm0, %v111_v31, 0.0  ;;  %v146_v44 = vsel %vm55_vm0, %v142_v32, 0.0 }
  0xbb   :  { %v49_v11 = vpop.trf.xlu0  ;;  %v177_v48 = vsel %vm55_vm0, %v173_v36, 0.0  ;;  %v85_v53 = vadd.f32 %v84_v42, %v83_v41  ;;  %v116_v54 = vadd.f32 %v115_v43, %v114_v45  ;;  %v147_v55 = vadd.f32 %v146_v44, %v145_v46 }
  0xbc   :  { %66 = vst.msk [vmem:[#allocation2 + $0x50] sm:$0xff] %vm55_vm0, %v49_v11  ;;  %v178_v59 = vadd.f32 %v177_v48, %v176_v47 }
  0xbf   :  { %v50_v12 = vpop.trf.xlu0 }
  0xc0   :  { %67 = vst.msk [vmem:[#allocation2 + $0x58] sm:$0xff] %vm55_vm0, %v50_v12 }
  0xc3   :  { %v51_v13 = vpop.trf.xlu0 }
  0xc4   :  { %68 = vst.msk [vmem:[#allocation2 + $0x60] sm:$0xff] %vm55_vm0, %v51_v13 }
  0xc7   :  { %v52_v14 = vpop.trf.xlu0  ;;  %v772_v24 = vld [vmem:[#allocation2 + $0x40] ss:$4 sm:$0xff]  ;;  %v774_v25 = vld [vmem:[#allocation2 + $0x41] ss:$4 sm:$0xff]  ;;  %v776_v26 = vld [vmem:[#allocation2 + $0x42] ss:$4 sm:$0xff] }
  0xc8   :  { %69 = vst.msk [vmem:[#allocation2 + $0x68] sm:$0xff] %vm55_vm0, %v52_v14  ;;  %v778_v27 = vld [vmem:[#allocation2 + $0x43] ss:$4 sm:$0xff]  ;;  %v81_v37 = vmul.f32 %v772_v24, %v772_v24  ;;  %v112_v38 = vmul.f32 %v774_v25, %v774_v25  ;;  %v143_v39 = vmul.f32 %v776_v26, %v776_v26 }
  0xc9   :  { %v174_v40 = vmul.f32 %v778_v27, %v778_v27 }
  0xca   :  { %v86_v49 = vsel %vm55_vm0, %v81_v37, 0.0  ;;  %v117_v50 = vsel %vm55_vm0, %v112_v38, 0.0  ;;  %v148_v51 = vsel %vm55_vm0, %v143_v39, 0.0 }
  0xcb   :  { %v53_v15 = vpop.trf.xlu0  ;;  %v179_v52 = vsel %vm55_vm0, %v174_v40, 0.0  ;;  %v87_v0 = vadd.f32 %v86_v49, %v85_v53  ;;  %v118_v1 = vadd.f32 %v117_v50, %v116_v54  ;;  %v149_v2 = vadd.f32 %v148_v51, %v147_v55 }
  0xcc   :  { %70 = vst.msk [vmem:[#allocation2 + $0x70] sm:$0xff] %vm55_vm0, %v53_v15  ;;  %v180_v4 = vadd.f32 %v179_v52, %v178_v59 }
  0xcf   :  { %v54_v28 = vpop.trf.xlu0 }
  0xd0   :  { %71 = vst.msk [vmem:[#allocation2 + $0x78] sm:$0xff] %vm55_vm0, %v54_v28 }
  0xd7   :  { %v817_v56 = vld [vmem:[#allocation2 + $0x60] ss:$4 sm:$0xff]  ;;  %v819_v57 = vld [vmem:[#allocation2 + $0x61] ss:$4 sm:$0xff]  ;;  %v821_v58 = vld [vmem:[#allocation2 + $0x62] ss:$4 sm:$0xff] }
  0xd8   :  { %v82_v60 = vmul.f32 %v817_v56, %v817_v56  ;;  %v113_v61 = vmul.f32 %v819_v57, %v819_v57  ;;  %v144_v62 = vmul.f32 %v821_v58, %v821_v58  ;;  %v829_v63 = vld [vmem:[#allocation2 + $0x63] ss:$4 sm:$0xff] }
  0xd9   :  { %v175_v3 = vmul.f32 %v829_v63, %v829_v63 }
  0xda   :  { %v88_v5 = vsel %vm55_vm0, %v82_v60, 0.0  ;;  %v119_v6 = vsel %vm55_vm0, %v113_v61, 0.0  ;;  %v150_v7 = vsel %vm55_vm0, %v144_v62, 0.0 }
  0xdb   :  { %v89_v8 = vadd.f32 %v88_v5, %v87_v0  ;;  %v120_v9 = vadd.f32 %v119_v6, %v118_v1  ;;  %v151_v10 = vadd.f32 %v150_v7, %v149_v2  ;;  %v181_v11 = vsel %vm55_vm0, %v175_v3, 0.0 }
  0xdc   :  { %v182_v12 = vadd.f32 %v181_v11, %v180_v4 }
  0xdd   :  { %v90_v13 = vrot.slane %v89_v8, 4  ;;  %v121_v14 = vrot.slane %v120_v9, 4  ;;  %v152_v15 = vrot.slane %v151_v10, 4 }
  0xde   :  { %v183_v31 = vrot.slane %v182_v12, 4 }
  0xdf   :  { %v91_v28 = vadd.f32 %v90_v13, %v89_v8  ;;  %v122_v29 = vadd.f32 %v121_v14, %v120_v9  ;;  %v153_v30 = vadd.f32 %v152_v15, %v151_v10 }
  0xe0   :  { %v184_v38 = vadd.f32 %v183_v31, %v182_v12 }
  0xe1   :  { %v92_v32 = vrot.slane %v91_v28, 2  ;;  %v123_v33 = vrot.slane %v122_v29, 2  ;;  %v154_v34 = vrot.slane %v153_v30, 2 }
  0xe2   :  { %v185_v44 = vrot.slane %v184_v38, 2 }
  0xe3   :  { %v93_v35 = vadd.f32 %v92_v32, %v91_v28  ;;  %v124_v36 = vadd.f32 %v123_v33, %v122_v29  ;;  %v155_v37 = vadd.f32 %v154_v34, %v153_v30 }
  0xe4   :  { %v186_v48 = vadd.f32 %v185_v44, %v184_v38 }
  0xe5   :  { %v94_v39 = vrot.slane %v93_v35, 1  ;;  %v125_v40 = vrot.slane %v124_v36, 1  ;;  %v156_v41 = vrot.slane %v155_v37, 1 }
  0xe6   :  { %v187_v50 = vrot.slane %v186_v48, 1 }
  0xe7   :  { %v95_v42 = vadd.f32 %v94_v39, %v93_v35  ;;  %v126_v43 = vadd.f32 %v125_v40, %v124_v36  ;;  %v157_v47 = vadd.f32 %v156_v41, %v155_v37 }
  0xe8   :  { %v188_v51 = vadd.f32 %v187_v50, %v186_v48 }
  0xe9   :  { %v96_v45 = vmax.f32 %v95_v42, 1e-24  ;;  %v127_v46 = vmax.f32 %v126_v43, 1e-24  ;;  %v158_v49 = vmax.f32 %v157_v47, 1e-24 }
  0xea   :  { %v189_v54 = vmax.f32 %v188_v51, 1e-24 }
  0xeb   :  { %637 = vrsqrt.f32 %v96_v45 }
  0xec   :  { %639 = vrsqrt.f32 %v127_v46 }
  0xed   :  { %641 = vrsqrt.f32 %v158_v49 }
  0xee   :  { %643 = vrsqrt.f32 %v189_v54 }
  0xf5   :  { %v638_v52 = vpop.eup %637 }
  0xf6   :  { %v640_v53 = vpop.eup %639  ;;  %v838_v55 = vmul.f32 %v638_v52, %v755_v16  ;;  %v841_v59 = vmul.f32 %v638_v52, %v762_v19  ;;  %v854_v16 = vmul.f32 %v638_v52, %v772_v24  ;;  %v866_v4 = vmul.f32 %v638_v52, %v817_v56 }
  0xf7   :  { %v844_v60 = vmul.f32 %v640_v53, %v757_v17  ;;  %v847_v61 = vmul.f32 %v640_v53, %v764_v20  ;;  %v642_v62 = vpop.eup %641  ;;  %v857_v19 = vmul.f32 %v640_v53, %v774_v25  ;;  %v869_v5 = vmul.f32 %v640_v53, %v819_v57 }
  0xf8   :  { %v860_v17 = vmul.f32 %v642_v62, %v759_v18  ;;  %v863_v20 = vmul.f32 %v642_v62, %v766_v21  ;;  %v878_v21 = vmul.f32 %v642_v62, %v776_v26  ;;  %v644_v8 = vpop.eup %643  ;;  %v883_v57 = vmul.f32 %v642_v62, %v821_v58 }
  0xf9   :  { %v195_v0 = vsub.f32 %v838_v55, %v844_v60  ;;  %v196_v1 = vsub.f32 %v841_v59, %v847_v61  ;;  %v197_v24 = vsub.f32 %v854_v16, %v857_v19  ;;  %v198_v56 = vsub.f32 %v866_v4, %v869_v5 }
  0xfa   :  { %v228_v25 = vsub.f32 %v838_v55, %v860_v17  ;;  %v229_v18 = vsub.f32 %v841_v59, %v863_v20  ;;  %v230_v26 = vsub.f32 %v854_v16, %v878_v21  ;;  %v890_v14 = vmul.f32 %v644_v8, %v768_v22 }
  0xfb   :  { %v199_v2 = vadd.f32 1e-06, %v195_v0  ;;  %v200_v3 = vadd.f32 1e-06, %v196_v1  ;;  %v201_v9 = vadd.f32 1e-06, %v197_v24  ;;  %v893_v15 = vmul.f32 %v644_v8, %v770_v23 }
  0xfc   :  { %v232_v10 = vadd.f32 1e-06, %v228_v25  ;;  %v233_v11 = vadd.f32 1e-06, %v229_v18  ;;  %v202_v28 = vadd.f32 1e-06, %v198_v56  ;;  %v231_v58 = vsub.f32 %v866_v4, %v883_v57 }
  0xfd   :  { %v203_v6 = vmul.f32 %v199_v2, %v199_v2  ;;  %v204_v7 = vmul.f32 %v200_v3, %v200_v3  ;;  %v205_v29 = vmul.f32 %v201_v9, %v201_v9  ;;  %v898_v32 = vmul.f32 %v644_v8, %v778_v27 }
  0xfe   :  { %v236_v30 = vmul.f32 %v232_v10, %v232_v10  ;;  %v237_v31 = vmul.f32 %v233_v11, %v233_v11  ;;  %v298_v34 = vsub.f32 %v844_v60, %v860_v17  ;;  %v234_v35 = vadd.f32 1e-06, %v230_v26 }
  0xff   :  { %v207_v12 = vsel %vm55_vm0, %v203_v6, 0.0  ;;  %v208_v13 = vsel %vm55_vm0, %v204_v7, 0.0  ;;  %v299_v22 = vsub.f32 %v847_v61, %v863_v20  ;;  %v206_v23 = vmul.f32 %v202_v28, %v202_v28 }
 0x100   :  { %v209_v33 = vadd.f32 %v208_v13, %v207_v12  ;;  %v263_v36 = vsub.f32 %v838_v55, %v890_v14  ;;  %v264_v37 = vsub.f32 %v841_v59, %v893_v15  ;;  %v210_v38 = vsel %vm55_vm0, %v205_v29, 0.0 }
 0x101   :  { %v235_v39 = vadd.f32 1e-06, %v231_v58  ;;  %v240_v27 = vsel %vm55_vm0, %v236_v30, 0.0  ;;  %v241_v40 = vsel %vm55_vm0, %v237_v31, 0.0  ;;  %v912_v41 = vmul.f32 %v644_v8, %v829_v63 }
 0x102   :  { %v211_v42 = vadd.f32 %v210_v38, %v209_v33  ;;  %v265_v43 = vsub.f32 %v854_v16, %v898_v32  ;;  %v302_v44 = vadd.f32 1e-06, %v298_v34  ;;  %v238_v45 = vmul.f32 %v234_v35, %v234_v35 }
 0x103   :  { %v303_v46 = vadd.f32 1e-06, %v299_v22  ;;  %v331_v47 = vsub.f32 %v844_v60, %v838_v55  ;;  %v332_v48 = vsub.f32 %v847_v61, %v841_v59  ;;  %v242_v49 = vadd.f32 %v241_v40, %v240_v27 }
 0x104   :  { %v267_v50 = vadd.f32 1e-06, %v263_v36  ;;  %v268_v51 = vadd.f32 1e-06, %v264_v37  ;;  %v212_v52 = vsel %vm55_vm0, %v206_v23, 0.0  ;;  %v239_v63 = vmul.f32 %v235_v39, %v235_v39 }
 0x105   :  { %v300_v53 = vsub.f32 %v857_v19, %v878_v21  ;;  %v213_v54 = vadd.f32 %v212_v52, %v211_v42  ;;  %v266_v62 = vsub.f32 %v866_v4, %v912_v41  ;;  %v269_v0 = vadd.f32 1e-06, %v265_v43 }
 0x106   :  { %v306_v1 = vmul.f32 %v302_v44, %v302_v44  ;;  %v243_v2 = vsel %vm55_vm0, %v238_v45, 0.0  ;;  %v307_v3 = vmul.f32 %v303_v46, %v303_v46  ;;  %v335_v24 = vadd.f32 1e-06, %v331_v47 }
 0x107   :  { %v336_v25 = vadd.f32 1e-06, %v332_v48  ;;  %v244_v18 = vadd.f32 %v243_v2, %v242_v49  ;;  %v271_v6 = vmul.f32 %v267_v50, %v267_v50  ;;  %v272_v7 = vmul.f32 %v268_v51, %v268_v51 }
 0x108   :  { %v301_v56 = vsub.f32 %v869_v5, %v883_v57  ;;  %v245_v8 = vsel %vm55_vm0, %v239_v63, 0.0  ;;  %v304_v9 = vadd.f32 1e-06, %v300_v53  ;;  %v333_v10 = vsub.f32 %v857_v19, %v854_v16 }
 0x109   :  { %v366_v11 = vsub.f32 %v844_v60, %v890_v14  ;;  %v214_v12 = vrot.slane %v213_v54, 4  ;;  %v270_v13 = vadd.f32 1e-06, %v266_v62  ;;  %v273_v26 = vmul.f32 %v269_v0, %v269_v0 }
 0x10a   :  { %v310_v28 = vsel %vm55_vm0, %v306_v1, 0.0  ;;  %v311_v29 = vsel %vm55_vm0, %v307_v3, 0.0  ;;  %v339_v58 = vmul.f32 %v335_v24, %v335_v24  ;;  %v340_v30 = vmul.f32 %v336_v25, %v336_v25 }
 0x10b   :  { %v367_v31 = vsub.f32 %v847_v61, %v893_v15  ;;  %v246_v33 = vadd.f32 %v245_v8, %v244_v18  ;;  %v275_v34 = vsel %vm55_vm0, %v271_v6, 0.0  ;;  %v276_v35 = vsel %vm55_vm0, %v272_v7, 0.0 }
 0x10c   :  { %v305_v22 = vadd.f32 1e-06, %v301_v56  ;;  %v308_v23 = vmul.f32 %v304_v9, %v304_v9  ;;  %v337_v36 = vadd.f32 1e-06, %v333_v10  ;;  %v370_v37 = vadd.f32 1e-06, %v366_v11 }
 0x10d   :  { %v371_v38 = vadd.f32 1e-06, %v367_v31  ;;  %v215_v39 = vadd.f32 %v214_v12, %v213_v54  ;;  %v274_v27 = vmul.f32 %v270_v13, %v270_v13  ;;  %v312_v40 = vadd.f32 %v311_v29, %v310_v28 }
 0x10e   :  { %v334_v42 = vsub.f32 %v869_v5, %v866_v4  ;;  %v278_v43 = vsel %vm55_vm0, %v273_v26, 0.0  ;;  %v343_v44 = vsel %vm55_vm0, %v339_v58, 0.0  ;;  %v344_v45 = vsel %vm55_vm0, %v340_v30, 0.0 }
 0x10f   :  { %v368_v46 = vsub.f32 %v857_v19, %v898_v32  ;;  %v247_v47 = vrot.slane %v246_v33, 4  ;;  %v277_v48 = vadd.f32 %v276_v35, %v275_v34  ;;  %v309_v49 = vmul.f32 %v305_v22, %v305_v22 }
 0x110   :  { %v401_v50 = vsub.f32 %v860_v17, %v890_v14  ;;  %v313_v51 = vsel %vm55_vm0, %v308_v23, 0.0  ;;  %v341_v52 = vmul.f32 %v337_v36, %v337_v36  ;;  %v374_v63 = vmul.f32 %v370_v37, %v370_v37 }
 0x111   :  { %v375_v53 = vmul.f32 %v371_v38, %v371_v38  ;;  %v216_v54 = vrot.slane %v215_v39, 2  ;;  %v314_v62 = vadd.f32 %v313_v51, %v312_v40  ;;  %v338_v0 = vadd.f32 1e-06, %v334_v42 }
 0x112   :  { %v345_v1 = vadd.f32 %v344_v45, %v343_v44  ;;  %v369_v2 = vsub.f32 %v869_v5, %v912_v41  ;;  %v372_v3 = vadd.f32 1e-06, %v368_v46  ;;  %v402_v24 = vsub.f32 %v863_v20, %v893_v15 }
 0x113   :  { %v403_v25 = vsub.f32 %v878_v21, %v898_v32  ;;  %v248_v18 = vadd.f32 %v247_v47, %v246_v33  ;;  %v279_v6 = vadd.f32 %v278_v43, %v277_v48  ;;  %v404_v7 = vsub.f32 %v883_v57, %v912_v41 }
 0x114   :  { %v405_v56 = vadd.f32 1e-06, %v401_v50  ;;  %v315_v8 = vsel %vm55_vm0, %v309_v49, 0.0  ;;  %v346_v9 = vsel %vm55_vm0, %v341_v52, 0.0  ;;  %v378_v10 = vsel %vm55_vm0, %v374_v63, 0.0 }
 0x115   :  { %v379_v11 = vsel %vm55_vm0, %v375_v53, 0.0  ;;  %v280_v12 = vsel %vm55_vm0, %v274_v27, 0.0  ;;  %v316_v13 = vadd.f32 %v315_v8, %v314_v62  ;;  %v342_v26 = vmul.f32 %v338_v0, %v338_v0 }
 0x116   :  { %v347_v28 = vadd.f32 %v346_v9, %v345_v1  ;;  %v373_v29 = vadd.f32 1e-06, %v369_v2  ;;  %v376_v58 = vmul.f32 %v372_v3, %v372_v3  ;;  %v406_v30 = vadd.f32 1e-06, %v402_v24 }
 0x117   :  { %v407_v31 = vadd.f32 1e-06, %v403_v25  ;;  %v217_v33 = vadd.f32 %v216_v54, %v215_v39  ;;  %v380_v34 = vadd.f32 %v379_v11, %v378_v10  ;;  %v408_v35 = vadd.f32 1e-06, %v404_v7 }
 0x118   :  { %v409_v22 = vmul.f32 %v405_v56, %v405_v56  ;;  %v249_v23 = vrot.slane %v248_v18, 2  ;;  %v281_v36 = vadd.f32 %v280_v12, %v279_v6  ;;  %v410_v37 = vmul.f32 %v406_v30, %v406_v30 }
 0x119   :  { %v434_v38 = vsub.f32 %v860_v17, %v838_v55  ;;  %v317_v40 = vrot.slane %v316_v13, 4  ;;  %v348_v27 = vsel %vm55_vm0, %v342_v26, 0.0  ;;  %v411_v42 = vmul.f32 %v407_v31, %v407_v31 }
 0x11a   :  { %v413_v43 = vsel %vm55_vm0, %v409_v22, 0.0  ;;  %v349_v44 = vadd.f32 %v348_v27, %v347_v28  ;;  %v377_v45 = vmul.f32 %v373_v29, %v373_v29  ;;  %v381_v46 = vsel %vm55_vm0, %v376_v58, 0.0 }
 0x11b   :  { %v414_v39 = vsel %vm55_vm0, %v410_v37, 0.0  ;;  %v382_v47 = vadd.f32 %v381_v46, %v380_v34  ;;  %v412_v48 = vmul.f32 %v408_v35, %v408_v35  ;;  %v435_v50 = vsub.f32 %v863_v20, %v841_v59 }
 0x11c   :  { %v415_v49 = vadd.f32 %v414_v39, %v413_v43  ;;  %v218_v51 = vrot.slane %v217_v33, 1  ;;  %v436_v52 = vsub.f32 %v878_v21, %v854_v16  ;;  %v437_v63 = vsub.f32 %v883_v57, %v866_v4 }
 0x11d   :  { %v438_v53 = vadd.f32 1e-06, %v434_v38  ;;  %v282_v54 = vrot.slane %v281_v36, 4  ;;  %v318_v62 = vadd.f32 %v317_v40, %v316_v13  ;;  %v416_v0 = vsel %vm55_vm0, %v411_v42, 0.0 }
 0x11e   :  { %v250_v1 = vadd.f32 %v249_v23, %v248_v18  ;;  %v350_v2 = vrot.slane %v349_v44, 4  ;;  %v383_v3 = vsel %vm55_vm0, %v377_v45, 0.0  ;;  %v417_v24 = vadd.f32 %v416_v0, %v415_v49 }
 0x11f   :  { %v384_v25 = vadd.f32 %v383_v3, %v382_v47  ;;  %v418_v6 = vsel %vm55_vm0, %v412_v48, 0.0  ;;  %v439_v7 = vadd.f32 1e-06, %v435_v50  ;;  %v440_v56 = vadd.f32 1e-06, %v436_v52 }
 0x120   :  { %v977_v8 = vadd.f32 %v218_v51, %v217_v33  ;;  %v419_v9 = vadd.f32 %v418_v6, %v417_v24  ;;  %v441_v10 = vadd.f32 1e-06, %v437_v63  ;;  %v442_v11 = vmul.f32 %v438_v53, %v438_v53 }
 0x121   :  { %v283_v12 = vadd.f32 %v282_v54, %v281_v36  ;;  %v319_v26 = vrot.slane %v318_v62, 2  ;;  %v443_v13 = vmul.f32 %v439_v7, %v439_v7  ;;  %v444_v28 = vmul.f32 %v440_v56, %v440_v56 }
 0x122   :  { %v351_v29 = vadd.f32 %v350_v2, %v349_v44  ;;  %v385_v18 = vrot.slane %v384_v25, 4  ;;  %v446_v58 = vsel %vm55_vm0, %v442_v11, 0.0  ;;  %645 = vrsqrt.f32 %v977_v8 }
 0x123   :  { %v447_v30 = vsel %vm55_vm0, %v443_v13, 0.0  ;;  %v251_v31 = vrot.slane %v250_v1, 1  ;;  %v420_v34 = vrot.slane %v419_v9, 4  ;;  %v445_v35 = vmul.f32 %v441_v10, %v441_v10 }
 0x124   :  { %v284_v33 = vrot.slane %v283_v12, 2  ;;  %v320_v22 = vadd.f32 %v319_v26, %v318_v62  ;;  %v448_v23 = vadd.f32 %v447_v30, %v446_v58  ;;  %v469_v36 = vsub.f32 %v860_v17, %v844_v60 }
 0x125   :  { %v449_v37 = vsel %vm55_vm0, %v444_v28, 0.0  ;;  %v470_v38 = vsub.f32 %v863_v20, %v847_v61  ;;  %v471_v40 = vsub.f32 %v878_v21, %v857_v19  ;;  %v472_v27 = vsub.f32 %v883_v57, %v869_v5 }
 0x126   :  { %v352_v42 = vrot.slane %v351_v29, 2  ;;  %v386_v43 = vadd.f32 %v385_v18, %v384_v25  ;;  %v450_v44 = vadd.f32 %v449_v37, %v448_v23  ;;  %v473_v45 = vadd.f32 1e-06, %v469_v36 }
 0x127   :  { %v421_v46 = vadd.f32 %v420_v34, %v419_v9  ;;  %v451_v39 = vsel %vm55_vm0, %v445_v35, 0.0  ;;  %v474_v47 = vadd.f32 1e-06, %v470_v38  ;;  %v475_v48 = vadd.f32 1e-06, %v471_v40 }
 0x128   :  { %v285_v49 = vadd.f32 %v284_v33, %v283_v12  ;;  %v452_v50 = vadd.f32 %v451_v39, %v450_v44  ;;  %v476_v51 = vadd.f32 1e-06, %v472_v27  ;;  %v477_v52 = vmul.f32 %v473_v45, %v473_v45 }
 0x129   :  { %v321_v63 = vrot.slane %v320_v22, 1  ;;  %v478_v53 = vmul.f32 %v474_v47, %v474_v47  ;;  %v504_v54 = vsub.f32 %v890_v14, %v838_v55  ;;  %v505_v62 = vsub.f32 %v893_v15, %v841_v59 }
 0x12a   :  { %v996_v0 = vadd.f32 %v251_v31, %v250_v1  ;;  %v453_v2 = vrot.slane %v452_v50, 4  ;;  %v479_v3 = vmul.f32 %v475_v48, %v475_v48  ;;  %v481_v24 = vsel %vm55_vm0, %v477_v52, 0.0 }
 0x12b   :  { %v353_v25 = vadd.f32 %v352_v42, %v351_v29  ;;  %v387_v6 = vrot.slane %v386_v43, 2  ;;  %v422_v7 = vrot.slane %v421_v46, 2  ;;  %v482_v56 = vsel %vm55_vm0, %v478_v53, 0.0 }
 0x12c   :  { %v480_v9 = vmul.f32 %v476_v51, %v476_v51  ;;  %v483_v10 = vadd.f32 %v482_v56, %v481_v24  ;;  %v506_v11 = vsub.f32 %v898_v32, %v854_v16  ;;  %v507_v55 = vsub.f32 %v912_v41, %v866_v4  ;;  %v646_v59 = vpop.eup %645 }
 0x12d   :  { %v286_v1 = vrot.slane %v285_v49, 1  ;;  %v1004_v12 = vadd.f32 %v321_v63, %v320_v22  ;;  %v508_v26 = vadd.f32 1e-06, %v504_v54  ;;  %v509_v13 = vadd.f32 1e-06, %v505_v62 }
 0x12e   :  { %647 = vrsqrt.f32 %v996_v0  ;;  %v454_v28 = vadd.f32 %v453_v2, %v452_v50  ;;  %v484_v29 = vsel %vm55_vm0, %v479_v3, 0.0  ;;  %v354_v18 = vrot.slane %v353_v25, 1 }
 0x12f   :  { %v388_v58 = vadd.f32 %v387_v6, %v386_v43  ;;  %v423_v30 = vadd.f32 %v422_v7, %v421_v46  ;;  %v485_v31 = vadd.f32 %v484_v29, %v483_v10  ;;  %v486_v16 = vsel %vm55_vm0, %v480_v9, 0.0 }
 0x130   :  { %v510_v34 = vadd.f32 1e-06, %v506_v11  ;;  %v511_v35 = vadd.f32 1e-06, %v507_v55  ;;  %v512_v4 = vmul.f32 %v508_v26, %v508_v26  ;;  %v1009_v33 = vadd.f32 %v286_v1, %v285_v49 }
 0x131   :  { %649 = vrsqrt.f32 %v1004_v12  ;;  %v487_v22 = vadd.f32 %v486_v16, %v485_v31  ;;  %v513_v23 = vmul.f32 %v509_v13, %v509_v13  ;;  %v455_v36 = vrot.slane %v454_v28, 2 }
 0x132   :  { %v514_v37 = vmul.f32 %v510_v34, %v510_v34  ;;  %v516_v38 = vsel %vm55_vm0, %v512_v4, 0.0  ;;  %v537_v40 = vsub.f32 %v890_v14, %v844_v60  ;;  %v515_v42 = vmul.f32 %v511_v35, %v511_v35 }
 0x133   :  { %v488_v27 = vrot.slane %v487_v22, 4  ;;  %v517_v43 = vsel %vm55_vm0, %v513_v23, 0.0  ;;  %v538_v44 = vsub.f32 %v893_v15, %v847_v61  ;;  %v1018_v45 = vadd.f32 %v354_v18, %v353_v25 }
 0x134   :  { %v389_v46 = vrot.slane %v388_v58, 1  ;;  %v424_v39 = vrot.slane %v423_v30, 1  ;;  %v518_v47 = vadd.f32 %v517_v43, %v516_v38  ;;  %v519_v49 = vsel %vm55_vm0, %v514_v37, 0.0 }
 0x135   :  { %v489_v48 = vadd.f32 %v488_v27, %v487_v22  ;;  %v539_v50 = vsub.f32 %v898_v32, %v857_v19  ;;  %v540_v60 = vsub.f32 %v912_v41, %v869_v5  ;;  %v456_v51 = vadd.f32 %v455_v36, %v454_v28 }
 0x136   :  { %v520_v52 = vadd.f32 %v519_v49, %v518_v47  ;;  %v541_v63 = vadd.f32 1e-06, %v537_v40  ;;  %v542_v53 = vadd.f32 1e-06, %v538_v44  ;;  %v221_v61 = vmul.f32 %v646_v59, %v977_v8 }
 0x137   :  { %vm222_vm1 = vcmp.eq.f32.partialorder %v977_v8, inf  ;;  %651 = vrsqrt.f32 %v1009_v33  ;;  %v521_v54 = vsel %vm55_vm0, %v515_v42, 0.0  ;;  %v490_v2 = vrot.slane %v489_v48, 2 }
 0x138   :  { %v648_v62 = vpop.eup %647  ;;  %v522_v3 = vadd.f32 %v521_v54, %v520_v52  ;;  %v543_v24 = vadd.f32 1e-06, %v539_v50  ;;  %v544_v19 = vadd.f32 1e-06, %v540_v60  ;;  %vm224_vm2 = vcmp.eq.f32.partialorder %v977_v8, 0.0 }
 0x139   :  { %653 = vrsqrt.f32 %v1018_v45  ;;  %v1031_v5 = vadd.f32 %v389_v46, %v388_v58  ;;  %v545_v25 = vmul.f32 %v541_v63, %v541_v63  ;;  %v546_v6 = vmul.f32 %v542_v53, %v542_v53 }
 0x13a   :  { %v1033_v7 = vadd.f32 %v424_v39, %v423_v30  ;;  %v457_v56 = vrot.slane %v456_v51, 1  ;;  %v523_v9 = vrot.slane %v522_v3, 4  ;;  %v547_v10 = vmul.f32 %v543_v24, %v543_v24 }
 0x13b   :  { %v650_v11 = vpop.eup %649  ;;  %v549_v55 = vsel %vm55_vm0, %v545_v25, 0.0  ;;  %v550_v59 = vsel %vm55_vm0, %v546_v6, 0.0  ;;  %v572_v1 = vsub.f32 %v890_v14, %v860_v17  ;;  %v573_v26 = vsub.f32 %v893_v15, %v863_v20 }
 0x13c   :  { %v491_v13 = vadd.f32 %v490_v2, %v489_v48  ;;  %v524_v28 = vadd.f32 %v523_v9, %v522_v3  ;;  %v548_v29 = vmul.f32 %v544_v19, %v544_v19  ;;  %v551_v18 = vadd.f32 %v550_v59, %v549_v55 }
 0x13d   :  { %v225_v58 = vand.u32 2147483648, %v977_v8  ;;  %v258_v30 = vand.u32 2147483648, %v996_v0  ;;  %v552_v31 = vsel %vm55_vm0, %v547_v10, 0.0  ;;  %v574_v16 = vsub.f32 %v898_v32, %v878_v21 }
 0x13e   :  { %v223_v17 = vsel %vm222_vm1, %v977_v8, %v221_v61  ;;  %vm255_vm3 = vcmp.eq.f32.partialorder %v996_v0, inf  ;;  %v525_v20 = vrot.slane %v524_v28, 2  ;;  %v553_v14 = vadd.f32 %v552_v31, %v551_v18 }
 0x13f   :  { %v575_v15 = vsub.f32 %v912_v41, %v883_v57  ;;  %vm290_vm4 = vcmp.eq.f32.partialorder %v1009_v33, inf  ;;  %655 = vrsqrt.f32 %v1033_v7  ;;  %v576_v34 = vadd.f32 1e-06, %v572_v1 }
 0x140   :  { %v577_v35 = vadd.f32 1e-06, %v573_v26  ;;  %v578_v4 = vadd.f32 1e-06, %v574_v16  ;;  %657 = vrsqrt.f32 %v1031_v5  ;;  %v1055_v21 = vadd.f32 %v457_v56, %v456_v51 }
 0x141   :  { %v492_v32 = vrot.slane %v491_v13, 1  ;;  %v554_v22 = vsel %vm55_vm0, %v548_v29, 0.0  ;;  %v652_v23 = vpop.eup %651  ;;  %vm257_vm5 = vcmp.eq.f32.partialorder %v996_v0, 0.0  ;;  %v526_v36 = vadd.f32 %v525_v20, %v524_v28 }
 0x142   :  { %v555_v37 = vadd.f32 %v554_v22, %v553_v14  ;;  %v579_v57 = vadd.f32 1e-06, %v575_v15  ;;  %v580_v41 = vmul.f32 %v576_v34, %v576_v34  ;;  %v226_v38 = vsel %vm224_vm2, %v225_v58, %v223_v17 }
 0x143   :  { %v254_v40 = vmul.f32 %v648_v62, %v996_v0  ;;  %v324_v27 = vmul.f32 %v650_v11, %v1004_v12  ;;  %v581_v42 = vmul.f32 %v577_v35, %v577_v35  ;;  %v654_v43 = vpop.eup %653  ;;  %v527_v44 = vrot.slane %v526_v36, 1 }
 0x144   :  { %v556_v46 = vrot.slane %v555_v37, 4  ;;  %v582_v39 = vmul.f32 %v578_v4, %v578_v4  ;;  %v584_v47 = vsel %vm55_vm0, %v580_v41, 0.0  ;;  %v289_v48 = vmul.f32 %v652_v23, %v1009_v33 }
 0x145   :  { %659 = vrsqrt.f32 %v1055_v21  ;;  %v1066_v49 = vadd.f32 %v492_v32, %v491_v13  ;;  %v585_v8 = vsel %vm55_vm0, %v581_v42, 0.0  ;;  %v1069_v50 = vadd.f32 %v527_v44, %v526_v36 }
 0x146   :  { %v557_v60 = vadd.f32 %v556_v46, %v555_v37  ;;  %v583_v51 = vmul.f32 %v579_v57, %v579_v57  ;;  %v586_v52 = vadd.f32 %v585_v8, %v584_v47  ;;  %v227_v63 = vadd.f32 0.5, %v226_v38 }
 0x147   :  { %vm292_vm6 = vcmp.eq.f32.partialorder %v1009_v33, 0.0  ;;  %v293_v53 = vand.u32 2147483648, %v1009_v33  ;;  %vm325_vm7 = vcmp.eq.f32.partialorder %v1004_v12, inf  ;;  %v256_v61 = vsel %vm255_vm3, %v996_v0, %v254_v40 }
 0x148   :  { %v326_v54 = vsel %vm325_vm7, %v1004_v12, %v324_v27  ;;  %661 = vrsqrt.f32 %v1069_v50  ;;  %v587_v62 = vsel %vm55_vm0, %v582_v39, 0.0  ;;  %v291_v2 = vsel %vm290_vm4, %v1009_v33, %v289_v48 }
 0x149   :  { %v328_v3 = vand.u32 2147483648, %v1004_v12  ;;  %v558_v24 = vrot.slane %v557_v60, 2  ;;  %v588_v19 = vadd.f32 %v587_v62, %v586_v52  ;;  %v656_v25 = vpop.eup %655  ;;  %vm327_vm8 = vcmp.eq.f32.partialorder %v1004_v12, 0.0 }
 0x14a   :  { %v357_v6 = vmul.f32 %v654_v43, %v1018_v45  ;;  %663 = vrsqrt.f32 %v1066_v49  ;;  %v589_v56 = vsel %vm55_vm0, %v583_v51, 0.0  ;;  %v658_v9 = vpop.eup %657  ;;  %v259_v10 = vsel %vm257_vm5, %v258_v30, %v256_v61 }
 0x14b   :  { %v329_v11 = vsel %vm327_vm8, %v328_v3, %v326_v54  ;;  %v559_v55 = vadd.f32 %v558_v24, %v557_v60  ;;  %v590_v59 = vadd.f32 %v589_v56, %v588_v19  ;;  %v260_v1 = vsub.f32 %v227_v63, %v259_v10 }
 0x14c   :  { %v294_v26 = vsel %vm292_vm6, %v293_v53, %v291_v2  ;;  %vm358_vm9 = vcmp.eq.f32.partialorder %v1018_v45, inf  ;;  %v427_v13 = vmul.f32 %v656_v25, %v1033_v7  ;;  %v330_v18 = vadd.f32 0.5, %v329_v11 }
 0x14d   :  { %v295_v12 = vsub.f32 %v227_v63, %v294_v26  ;;  %v560_v28 = vrot.slane %v559_v55, 1  ;;  %v591_v29 = vrot.slane %v590_v59, 4  ;;  %v359_v58 = vsel %vm358_vm9, %v1018_v45, %v357_v6 }
 0x14e   :  { %v361_v0 = vand.u32 2147483648, %v1018_v45  ;;  %v392_v30 = vmul.f32 %v658_v9, %v1031_v5  ;;  %v261_v33 = vmax.f32 %v260_v1, 0.0  ;;  %vm360_vm10 = vcmp.eq.f32.partialorder %v1018_v45, 0.0 }
 0x14f   :  { %v660_v31 = vpop.eup %659  ;;  %v1097_v16 = vadd.f32 %v560_v28, %v559_v55  ;;  %v592_v17 = vadd.f32 %v591_v29, %v590_v59  ;;  %vm428_vm11 = vcmp.eq.f32.partialorder %v1033_v7, inf  ;;  %v296_v20 = vmax.f32 %v295_v12, 0.0 }
 0x150   :  { %v362_v14 = vsel %vm360_vm10, %v361_v0, %v359_v58  ;;  %v429_v15 = vsel %vm428_vm11, %v1033_v7, %v427_v13  ;;  %vm393_vm12 = vcmp.eq.f32.partialorder %v1031_v5, inf  ;;  %v431_v4 = vand.u32 2147483648, %v1033_v7 }
 0x151   :  { %665 = vrsqrt.f32 %v1097_v16  ;;  %v363_v35 = vsub.f32 %v330_v18, %v362_v14  ;;  %v593_v32 = vrot.slane %v592_v17, 2  ;;  %v394_v22 = vsel %vm393_vm12, %v1031_v5, %v392_v30 }
 0x152   :  { %v662_v34 = vpop.eup %661  ;;  %vm430_vm13 = vcmp.eq.f32.partialorder %v1033_v7, 0.0  ;;  %v460_v45 = vmul.f32 %v660_v31, %v1055_v21  ;;  %v396_v36 = vand.u32 2147483648, %v1031_v5  ;;  %v297_v41 = vadd.f32 %v296_v20, %v261_v33 }
 0x153   :  { %v432_v37 = vsel %vm430_vm13, %v431_v4, %v429_v15  ;;  %v594_v57 = vadd.f32 %v593_v32, %v592_v17  ;;  %vm395_vm14 = vcmp.eq.f32.partialorder %v1031_v5, 0.0  ;;  %v530_v38 = vmul.f32 %v662_v34, %v1069_v50 }
 0x154   :  { %v664_v23 = vpop.eup %663  ;;  %v364_v40 = vmax.f32 %v363_v35, 0.0  ;;  %v397_v27 = vsel %vm395_vm14, %v396_v36, %v394_v22  ;;  %vm461_vm15 = vcmp.eq.f32.partialorder %v1055_v21, inf  ;;  %v433_v44 = vadd.f32 0.5, %v432_v37 }
 0x155   :  { %v595_v42 = vrot.slane %v594_v57, 1  ;;  %v398_v43 = vsub.f32 %v330_v18, %v397_v27  ;;  %v462_v7 = vsel %vm461_vm15, %v1055_v21, %v460_v45  ;;  %v495_v46 = vmul.f32 %v664_v23, %v1066_v49 }
 0x156   :  { %v464_v39 = vand.u32 2147483648, %v1055_v21  ;;  %vm531_vm1 = vcmp.eq.f32.partialorder %v1069_v50, inf  ;;  %v365_v48 = vadd.f32 %v364_v40, %v297_v41  ;;  %vm463_vm2 = vcmp.eq.f32.partialorder %v1055_v21, 0.0 }
 0x157   :  { %v596_v47 = vadd.f32 %v595_v42, %v594_v57  ;;  %v532_v5 = vsel %vm531_vm1, %v1069_v50, %v530_v38  ;;  %vm496_vm3 = vcmp.eq.f32.partialorder %v1066_v49, inf  ;;  %v534_v60 = vand.u32 2147483648, %v1069_v50 }
 0x158   :  { %v465_v8 = vsel %vm463_vm2, %v464_v39, %v462_v7  ;;  %v399_v52 = vmax.f32 %v398_v43, 0.0  ;;  %v497_v53 = vsel %vm496_vm3, %v1066_v49, %v495_v46  ;;  %vm533_vm4 = vcmp.eq.f32.partialorder %v1069_v50, 0.0 }
 0x159   :  { %667 = vrsqrt.f32 %v596_v47  ;;  %v466_v63 = vsub.f32 %v433_v44, %v465_v8  ;;  %v499_v61 = vand.u32 2147483648, %v1066_v49  ;;  %v535_v54 = vsel %vm533_vm4, %v534_v60, %v532_v5 }
 0x15a   :  { %v400_v62 = vadd.f32 %v399_v52, %v365_v48  ;;  %vm498_vm5 = vcmp.eq.f32.partialorder %v1066_v49, 0.0  ;;  %vm564_vm6 = vcmp.eq.f32.partialorder %v1097_v16, inf  ;;  %v536_v19 = vadd.f32 0.5, %v535_v54 }
 0x15b   :  { %v666_v51 = vpop.eup %665  ;;  %v500_v2 = vsel %vm498_vm5, %v499_v61, %v497_v53  ;;  %v467_v3 = vmax.f32 %v466_v63, 0.0  ;;  %v567_v6 = vand.u32 2147483648, %v1097_v16  ;;  %vm566_vm7 = vcmp.eq.f32.partialorder %v1097_v16, 0.0 }
 0x15c   :  { %v563_v21 = vmul.f32 %v666_v51, %v1097_v16  ;;  %v501_v24 = vsub.f32 %v433_v44, %v500_v2  ;;  %v607_v55 = vlaneseq  ;;  %vm599_vm8 = vcmp.eq.f32.partialorder %v596_v47, inf }
 0x15d   :  { %v468_v56 = vadd.f32 %v467_v3, %v400_v62  ;;  %v602_v1 = vand.u32 2147483648, %v596_v47  ;;  %vm601_vm9 = vcmp.eq.f32.partialorder %v596_v47, 0.0  ;;  %vm617_vm11 = vcmask 0  }
 0x15e   :  { %v565_v25 = vsel %vm564_vm6, %v1097_v16, %v563_v21  ;;  %v502_v9 = vmax.f32 %v501_v24, 0.0  ;;  %v608_v28 = vand.u32 127, %v607_v55 }
 0x15f   :  { %v568_v50 = vsel %vm566_vm7, %v567_v6, %v565_v25 }
 0x160   :  { %v569_v10 = vsub.f32 %v536_v19, %v568_v50  ;;  %v503_v59 = vadd.f32 %v502_v9, %v468_v56  ;;  %vm611_vm10 = vcmp.lt.s32.totalorder %v608_v28, 8 }
 0x162   :  { %v570_v26 = vmax.f32 %v569_v10, 0.0 }
 0x163   :  { %v668_v11 = vpop.eup %667 }
 0x164   :  { %v598_v49 = vmul.f32 %v668_v11, %v596_v47  ;;  %v571_v29 = vadd.f32 %v570_v26, %v503_v59 }
 0x166   :  { %v600_v12 = vsel %vm599_vm8, %v596_v47, %v598_v49 }
 0x167   :  { %v603_v13 = vsel %vm601_vm9, %v602_v1, %v600_v12 }
 0x168   :  { %v604_v18 = vsub.f32 %v536_v19, %v603_v13 }
 0x16a   :  { %v605_v58 = vmax.f32 %v604_v18, 0.0 }
 0x16c   :  { %v606_v31 = vadd.f32 %v605_v58, %v571_v29 }
 0x16e   :  { %v612_v0 = vsel %vm611_vm10, %v606_v31, 0.0 }
 0x16f   :  { %v613_v30 = vsel %vm55_vm0, %v612_v0, 0.0 }
 0x170   :  { %614 = vadd.xlane.f32.xlu0 %v613_v30 }
 0x1fd   :  { %v615_v16 = vpop.xlane.xlu0 %614 }
 0x1fe   :  { %618 = vst.msk [vmem:[#allocation6] sm:$0x1] %vm617_vm11, %v615_v16 }
 0x1ff   :  { %702 = shalt.err (!%p699_p12)
}
 0x200   :  { %s703_s23 = scalar_lea.hbm %s1143_s1, 16 }
 0x201   :  { %p704_p13 = scmp.ne.s32.totalorder %s1143_s1, %s703_s23  ;;  %p707_p0 = scmp.lt.u32.totalorder %s703_s23, %s1143_s1 }
 0x203   :  { %p709_p1 = pnand %p707_p0, %p704_p13 }
 0x205   :  { %712 = shalt.err (!%p709_p1)
}
 0x206   :  { %628 = dma.vmem_to_hbm [thread:$0]  %s626_s18, 16, %s1143_s1, [#allocation5]  }
 0x207   :  { %715 = dma.done.wait [#allocation5], 16  }
 0x208   :  { %716 = vsyncadd [#allocation5], 4294967280 }
 0x209   :  { %632 = vsyncpa [#allocation4], 1 }
 0x20a   :  { %633 = vsyncpa [#allocation5], 1 }

</bundles_post_ra>
